<compile_context>
chip_gen: v6e
topology: v6e:2x2x1
jax: 0.10.0
libtpu: 0.0.40
codegen_flags: <defaults>
</compile_context>

<pallas_src>
import jax
import jax.numpy as jnp
from jax.experimental import pallas as pl
from jax.experimental.pallas import tpu as pltpu


def lstm_tagger_kernel(ids_ref, emb_ref, wih_ref, whh_ref, b_ref,
                       wout_ref, bout_ref, out_ref):
    """Per-grid-step shapes:
      ids_ref:  (1, T, 1) int32        emb_ref:  (V, E)
      wih_ref:  (E, 4H)                whh_ref:  (H, 4H)
      b_ref:    (1, 4H)                wout_ref: (H, TAGS)
      bout_ref: (1, TAGS)              out_ref:  (1, T, TAGS)
    The 4H gate axis is packed in (i, f, o, g) order."""
    T = out_ref.shape[1]
    V = emb_ref.shape[0]
    H = whh_ref.shape[0]

    # --- fused embedding lookup: one-hot(ids) @ table (exact gather) ---
    ids = ids_ref[0]                                               # (T, 1)
    vocab_iota = jax.lax.broadcasted_iota(jnp.int32, (T, V), 1)    # (T, V)
    onehot = (ids == vocab_iota).astype(jnp.float32)               # (T, V)
    embeds = jnp.dot(onehot, emb_ref[...],
                     preferred_element_type=jnp.float32)           # (T, E)

    # --- hoisted input projection: one batched matmul + bias, kept in vregs ---
    xw = (jnp.dot(embeds, wih_ref[...],
                  preferred_element_type=jnp.float32)
          + b_ref[...])                                            # (T, 4H)

    whh = whh_ref[...]                                             # (H, 4H)

    # --- fully unrolled recurrence, hidden states stay register-resident ---
    h = jnp.zeros((1, H), jnp.float32)
    c = jnp.zeros((1, H), jnp.float32)
    hs = []
    for t in range(T):                                             # T static & tiny
        gates = xw[t:t + 1, :] + jnp.dot(
            h, whh, preferred_element_type=jnp.float32)            # (1, 4H)
        ifo = jax.nn.sigmoid(gates[:, :3 * H])                     # (1, 3H)
        g = jnp.tanh(gates[:, 3 * H:])                             # (1, H)
        i = ifo[:, 0 * H:1 * H]
        f = ifo[:, 1 * H:2 * H]
        o = ifo[:, 2 * H:3 * H]
        c = f * c + i * g
        h = o * jnp.tanh(c)
        hs.append(h)
    hmat = jnp.concatenate(hs, axis=0)                             # (T, H)

    # --- batched epilogue: hidden2tag + log_softmax, single output store ---
    tag = (jnp.dot(hmat, wout_ref[...],
                   preferred_element_type=jnp.float32)
           + bout_ref[...])                                        # (T, TAGS)
    m = jnp.max(tag, axis=-1, keepdims=True)
    lse = m + jnp.log(jnp.sum(jnp.exp(tag - m), axis=-1, keepdims=True))
    out_ref[0] = (tag - lse).astype(out_ref.dtype)


def lstm_tagger_forward_batch(sentences, kparams):
    """sentences: (B, T) int32 token ids. Returns (B, T, tagset_size) log-probs."""
    emb = kparams["embedding"]                    # (V, E)
    wih_t = kparams["wih_t"]                      # (E, 4H)  gate order (i,f,o,g)
    whh_t = kparams["whh_t"]                      # (H, 4H)
    b = kparams["b"]                              # (1, 4H) = b_ih + b_hh
    wout_t = kparams["wout_t"]                    # (H, tagset)
    bout = kparams["bout"]                        # (1, tagset)

    B, T = sentences.shape
    V, E = emb.shape
    H = whh_t.shape[0]
    tagset = wout_t.shape[1]
    ids = sentences.astype(jnp.int32).reshape(B, T, 1)

    const2 = lambda bb: (0, 0)   # weights: same block every grid step -> resident
    in_specs = [
        pl.BlockSpec((1, T, 1), lambda bb: (bb, 0, 0)),            # ids per sentence
        pl.BlockSpec((V, E), const2),                              # embedding table
        pl.BlockSpec((E, 4 * H), const2),                          # W_ih^T
        pl.BlockSpec((H, 4 * H), const2),                          # W_hh^T
        pl.BlockSpec((1, 4 * H), const2),                          # bias
        pl.BlockSpec((H, tagset), const2),                         # W_out^T
        pl.BlockSpec((1, tagset), const2),                         # b_out
    ]
    out_specs = pl.BlockSpec((1, T, tagset), lambda bb: (bb, 0, 0))

    return pl.pallas_call(
        lstm_tagger_kernel,
        out_shape=jax.ShapeDtypeStruct((B, T, tagset), jnp.float32),
        grid=(B,),
        in_specs=in_specs,
        out_specs=out_specs,
        compiler_params=pltpu.CompilerParams(
            dimension_semantics=("parallel",)),    # sentence axis -> v7x 2 TCs
    )(ids, emb, wih_t, whh_t, b, wout_t, bout)


def lstm_tagger_forward(sentence, kparams):
    """Single sentence (T,) convenience wrapper. Returns (T, tagset_size)."""
    return lstm_tagger_forward_batch(sentence[None, :], kparams)[0]


def init_params(key, embedding_dim, hidden_dim, vocab_size, tagset_size):
    """PyTorch-layout parameters (gate order i, f, g, o)."""
    ks = jax.random.split(key, 7)
    scale = 0.1
    return {
        "embedding": jax.random.normal(ks[0], (vocab_size, embedding_dim), jnp.float32),
        "w_ih": scale * jax.random.normal(ks[1], (4 * hidden_dim, embedding_dim), jnp.float32),
        "w_hh": scale * jax.random.normal(ks[2], (4 * hidden_dim, hidden_dim), jnp.float32),
        "b_ih": scale * jax.random.normal(ks[3], (4 * hidden_dim,), jnp.float32),
        "b_hh": scale * jax.random.normal(ks[4], (4 * hidden_dim,), jnp.float32),
        "w_out": scale * jax.random.normal(ks[5], (tagset_size, hidden_dim), jnp.float32),
        "b_out": scale * jax.random.normal(ks[6], (tagset_size,), jnp.float32),
    }


def _repack_gates(w):
    """Reorder the packed 4H axis from PyTorch (i, f, g, o) to (i, f, o, g)."""
    i, f, g, o = jnp.split(w, 4, axis=0)
    return jnp.concatenate([i, f, o, g], axis=0)


def prepare_kernel_params(params):
    """One-time host-side repack/transposition into the kernel layout."""
    w_ih = _repack_gates(params["w_ih"])                 # (4H, E) in (i,f,o,g)
    w_hh = _repack_gates(params["w_hh"])                 # (4H, H)
    b = _repack_gates((params["b_ih"] + params["b_hh"])[:, None])[:, 0]
    return {
        "embedding": params["embedding"],                # (V, E)
        "wih_t": jnp.asarray(w_ih.T),                    # (E, 4H)
        "whh_t": jnp.asarray(w_hh.T),                    # (H, 4H)
        "b": b.reshape(1, -1),                           # (1, 4H)
        "wout_t": jnp.asarray(params["w_out"].T),        # (H, tagset)
        "bout": params["b_out"].reshape(1, -1),          # (1, tagset)
    }


def reference_forward(sentence, params):
    """Pure-JAX reference matching PyTorch LSTMTagger semantics (i,f,g,o order)."""
    embeds = jnp.take(params["embedding"], sentence, axis=0)       # (T, E)
    H = params["w_hh"].shape[1]
    wih_t = params["w_ih"].T
    whh_t = params["w_hh"].T
    b = (params["b_ih"] + params["b_hh"]).reshape(1, -1)

    def step(carry, x_t):
        h, c = carry
        gates = x_t[None, :] @ wih_t + h @ whh_t + b
        i = jax.nn.sigmoid(gates[:, 0 * H:1 * H])
        f = jax.nn.sigmoid(gates[:, 1 * H:2 * H])
        g = jnp.tanh(gates[:, 2 * H:3 * H])
        o = jax.nn.sigmoid(gates[:, 3 * H:4 * H])
        c = f * c + i * g
        h = o * jnp.tanh(c)
        return (h, c), h[0]

    init = (jnp.zeros((1, H), jnp.float32), jnp.zeros((1, H), jnp.float32))
    _, hs = jax.lax.scan(step, init, embeds)
    tag_space = hs @ params["w_out"].T + params["b_out"][None, :]
    return jax.nn.log_softmax(tag_space, axis=1)


if __name__ == "__main__":
    EMBEDDING_DIM = 32
    HIDDEN_DIM = 32
    VOCAB_SIZE = 16
    TAGSET_SIZE = 8
    SEQ_LEN = 8
    BATCH = 2

    key = jax.random.PRNGKey(0)
    k_param, k_sent = jax.random.split(key)
    params = init_params(k_param, EMBEDDING_DIM, HIDDEN_DIM, VOCAB_SIZE, TAGSET_SIZE)
    kparams = prepare_kernel_params(params)
    sentences = jax.random.randint(k_sent, (BATCH, SEQ_LEN), 0, VOCAB_SIZE,
                                   dtype=jnp.int32)

    tag_scores = lstm_tagger_forward_batch(sentences, kparams)
    jax.block_until_ready(tag_scores)
    assert tag_scores.shape == (BATCH, SEQ_LEN, TAGSET_SIZE)

    for bidx in range(BATCH):
        ref = reference_forward(sentences[bidx], params)
        assert jnp.allclose(tag_scores[bidx], ref, atol=1e-5, rtol=1e-5), \
            float(jnp.max(jnp.abs(tag_scores[bidx] - ref)))

    # Single-sentence wrapper (module's original signature) also works.
    single = lstm_tagger_forward(sentences[0], kparams)
    jax.block_until_ready(single)
    assert jnp.allclose(single, reference_forward(sentences[0], params),
                        atol=1e-5, rtol=1e-5)

    print("KERNEL_OK")
</pallas_src>

<mosaic_0001>
module attributes {stable_mosaic.version = 11 : i64} {
  func.func @lstm_tagger_kernel(%arg0: i32, %arg1: memref<1x8x1xi32, #tpu.memory_space<vmem>>, %arg2: memref<16x32xf32, #tpu.memory_space<vmem>>, %arg3: memref<32x128xf32, #tpu.memory_space<vmem>>, %arg4: memref<32x128xf32, #tpu.memory_space<vmem>>, %arg5: memref<1x128xf32, #tpu.memory_space<vmem>>, %arg6: memref<32x8xf32, #tpu.memory_space<vmem>>, %arg7: memref<1x8xf32, #tpu.memory_space<vmem>>, %arg8: memref<1x8x8xf32, #tpu.memory_space<vmem>>) attributes {dimension_semantics = [#tpu.dimension_semantics<parallel>], iteration_bounds = array<i64: 2>, scalar_prefetch = 0 : i64, scratch_operands = 0 : i64, tpu.core_type = #tpu.core_type<tc>, window_params = [{transform_indices = @transform_0, window_bounds = array<i64: 1, 8, 1>}, {pipeline_mode = #tpu.pipeline_mode<synchronous>, transform_indices = @transform_1, window_bounds = array<i64: 16, 32>}, {pipeline_mode = #tpu.pipeline_mode<synchronous>, transform_indices = @transform_2, window_bounds = array<i64: 32, 128>}, {pipeline_mode = #tpu.pipeline_mode<synchronous>, transform_indices = @transform_3, window_bounds = array<i64: 32, 128>}, {pipeline_mode = #tpu.pipeline_mode<synchronous>, transform_indices = @transform_4, window_bounds = array<i64: 1, 128>}, {pipeline_mode = #tpu.pipeline_mode<synchronous>, transform_indices = @transform_5, window_bounds = array<i64: 32, 8>}, {pipeline_mode = #tpu.pipeline_mode<synchronous>, transform_indices = @transform_6, window_bounds = array<i64: 1, 8>}, {transform_indices = @transform_7, window_bounds = array<i64: 1, 8, 8>}]} {
    %c0 = arith.constant 0 : index
    %c0_0 = arith.constant 0 : index
    %c0_1 = arith.constant 0 : index
    %0 = vector.load %arg1[%c0, %c0_0, %c0_1] : memref<1x8x1xi32, #tpu.memory_space<vmem>>, vector<1x8x1xi32>
    %1 = vector.shape_cast %0 : vector<1x8x1xi32> to vector<8x1xi32>
    %2 = tpu.iota {dimensions = array<i32: 1>} : vector<8x16xi32>
    %3 = vector.broadcast %1 : vector<8x1xi32> to vector<8x16xi32>
    %4 = arith.cmpi eq, %3, %2 : vector<8x16xi32>
    %5 = arith.extui %4 : vector<8x16xi1> to vector<8x16xi32>
    %6 = arith.sitofp %5 : vector<8x16xi32> to vector<8x16xf32>
    %c0_2 = arith.constant 0 : index
    %c0_3 = arith.constant 0 : index
    %7 = vector.load %arg2[%c0_2, %c0_3] : memref<16x32xf32, #tpu.memory_space<vmem>>, vector<16x32xf32>
    %cst = arith.constant dense<0.000000e+00> : vector<8x32xf32>
    %8 = tpu.matmul %6, %7, %cst {dimension_numbers = #tpu.dot_dimension_numbers<[1], [0], [0], [1], [0, 0, 1, 1], [], []>} : vector<8x16xf32>, vector<16x32xf32>, vector<8x32xf32> -> vector<8x32xf32>
    %c0_4 = arith.constant 0 : index
    %c0_5 = arith.constant 0 : index
    %9 = vector.load %arg3[%c0_4, %c0_5] : memref<32x128xf32, #tpu.memory_space<vmem>>, vector<32x128xf32>
    %cst_6 = arith.constant dense<0.000000e+00> : vector<8x128xf32>
    %10 = tpu.matmul %8, %9, %cst_6 {dimension_numbers = #tpu.dot_dimension_numbers<[1], [0], [0], [1], [0, 0, 1, 1], [], []>} : vector<8x32xf32>, vector<32x128xf32>, vector<8x128xf32> -> vector<8x128xf32>
    %c0_7 = arith.constant 0 : index
    %c0_8 = arith.constant 0 : index
    %11 = vector.load %arg5[%c0_7, %c0_8] : memref<1x128xf32, #tpu.memory_space<vmem>>, vector<1x128xf32>
    %12 = vector.broadcast %11 : vector<1x128xf32> to vector<8x128xf32>
    %13 = arith.addf %10, %12 : vector<8x128xf32>
    %c0_9 = arith.constant 0 : index
    %c0_10 = arith.constant 0 : index
    %14 = vector.load %arg4[%c0_9, %c0_10] : memref<32x128xf32, #tpu.memory_space<vmem>>, vector<32x128xf32>
    %cst_11 = arith.constant 0.000000e+00 : f32
    %15 = vector.broadcast %cst_11 : f32 to vector<1x32xf32>
    %cst_12 = arith.constant 0.000000e+00 : f32
    %16 = vector.broadcast %cst_12 : f32 to vector<1x32xf32>
    %17 = vector.extract_strided_slice %13 {offsets = [0, 0], sizes = [1, 128], strides = [1, 1]} : vector<8x128xf32> to vector<1x128xf32>
    %cst_13 = arith.constant dense<0.000000e+00> : vector<1x128xf32>
    %18 = tpu.matmul %15, %14, %cst_13 {dimension_numbers = #tpu.dot_dimension_numbers<[1], [0], [0], [1], [0, 0, 1, 1], [], []>} : vector<1x32xf32>, vector<32x128xf32>, vector<1x128xf32> -> vector<1x128xf32>
    %19 = arith.addf %17, %18 : vector<1x128xf32>
    %20 = vector.extract_strided_slice %19 {offsets = [0, 0], sizes = [1, 96], strides = [1, 1]} : vector<1x128xf32> to vector<1x96xf32>
    %21 = arith.negf %20 : vector<1x96xf32>
    %22 = math.exp %21 : vector<1x96xf32>
    %cst_14 = arith.constant 1.000000e+00 : f32
    %23 = vector.broadcast %cst_14 : f32 to vector<1x96xf32>
    %24 = arith.addf %23, %22 : vector<1x96xf32>
    %25 = arith.divf %23, %24 : vector<1x96xf32>
    %26 = vector.extract_strided_slice %19 {offsets = [0, 96], sizes = [1, 32], strides = [1, 1]} : vector<1x128xf32> to vector<1x32xf32>
    %27 = math.tanh %26 : vector<1x32xf32>
    %28 = vector.extract_strided_slice %25 {offsets = [0, 0], sizes = [1, 32], strides = [1, 1]} : vector<1x96xf32> to vector<1x32xf32>
    %29 = vector.extract_strided_slice %25 {offsets = [0, 32], sizes = [1, 32], strides = [1, 1]} : vector<1x96xf32> to vector<1x32xf32>
    %30 = vector.extract_strided_slice %25 {offsets = [0, 64], sizes = [1, 32], strides = [1, 1]} : vector<1x96xf32> to vector<1x32xf32>
    %31 = arith.mulf %29, %16 : vector<1x32xf32>
    %32 = arith.mulf %28, %27 : vector<1x32xf32>
    %33 = arith.addf %31, %32 : vector<1x32xf32>
    %34 = math.tanh %33 : vector<1x32xf32>
    %35 = arith.mulf %30, %34 : vector<1x32xf32>
    %36 = vector.extract_strided_slice %13 {offsets = [1, 0], sizes = [1, 128], strides = [1, 1]} : vector<8x128xf32> to vector<1x128xf32>
    %cst_15 = arith.constant dense<0.000000e+00> : vector<1x128xf32>
    %37 = tpu.matmul %35, %14, %cst_15 {dimension_numbers = #tpu.dot_dimension_numbers<[1], [0], [0], [1], [0, 0, 1, 1], [], []>} : vector<1x32xf32>, vector<32x128xf32>, vector<1x128xf32> -> vector<1x128xf32>
    %38 = arith.addf %36, %37 : vector<1x128xf32>
    %39 = vector.extract_strided_slice %38 {offsets = [0, 0], sizes = [1, 96], strides = [1, 1]} : vector<1x128xf32> to vector<1x96xf32>
    %40 = arith.negf %39 : vector<1x96xf32>
    %41 = math.exp %40 : vector<1x96xf32>
    %cst_16 = arith.constant 1.000000e+00 : f32
    %42 = vector.broadcast %cst_16 : f32 to vector<1x96xf32>
    %43 = arith.addf %42, %41 : vector<1x96xf32>
    %44 = arith.divf %42, %43 : vector<1x96xf32>
    %45 = vector.extract_strided_slice %38 {offsets = [0, 96], sizes = [1, 32], strides = [1, 1]} : vector<1x128xf32> to vector<1x32xf32>
    %46 = math.tanh %45 : vector<1x32xf32>
    %47 = vector.extract_strided_slice %44 {offsets = [0, 0], sizes = [1, 32], strides = [1, 1]} : vector<1x96xf32> to vector<1x32xf32>
    %48 = vector.extract_strided_slice %44 {offsets = [0, 32], sizes = [1, 32], strides = [1, 1]} : vector<1x96xf32> to vector<1x32xf32>
    %49 = vector.extract_strided_slice %44 {offsets = [0, 64], sizes = [1, 32], strides = [1, 1]} : vector<1x96xf32> to vector<1x32xf32>
    %50 = arith.mulf %48, %33 : vector<1x32xf32>
    %51 = arith.mulf %47, %46 : vector<1x32xf32>
    %52 = arith.addf %50, %51 : vector<1x32xf32>
    %53 = math.tanh %52 : vector<1x32xf32>
    %54 = arith.mulf %49, %53 : vector<1x32xf32>
    %55 = vector.extract_strided_slice %13 {offsets = [2, 0], sizes = [1, 128], strides = [1, 1]} : vector<8x128xf32> to vector<1x128xf32>
    %cst_17 = arith.constant dense<0.000000e+00> : vector<1x128xf32>
    %56 = tpu.matmul %54, %14, %cst_17 {dimension_numbers = #tpu.dot_dimension_numbers<[1], [0], [0], [1], [0, 0, 1, 1], [], []>} : vector<1x32xf32>, vector<32x128xf32>, vector<1x128xf32> -> vector<1x128xf32>
    %57 = arith.addf %55, %56 : vector<1x128xf32>
    %58 = vector.extract_strided_slice %57 {offsets = [0, 0], sizes = [1, 96], strides = [1, 1]} : vector<1x128xf32> to vector<1x96xf32>
    %59 = arith.negf %58 : vector<1x96xf32>
    %60 = math.exp %59 : vector<1x96xf32>
    %cst_18 = arith.constant 1.000000e+00 : f32
    %61 = vector.broadcast %cst_18 : f32 to vector<1x96xf32>
    %62 = arith.addf %61, %60 : vector<1x96xf32>
    %63 = arith.divf %61, %62 : vector<1x96xf32>
    %64 = vector.extract_strided_slice %57 {offsets = [0, 96], sizes = [1, 32], strides = [1, 1]} : vector<1x128xf32> to vector<1x32xf32>
    %65 = math.tanh %64 : vector<1x32xf32>
    %66 = vector.extract_strided_slice %63 {offsets = [0, 0], sizes = [1, 32], strides = [1, 1]} : vector<1x96xf32> to vector<1x32xf32>
    %67 = vector.extract_strided_slice %63 {offsets = [0, 32], sizes = [1, 32], strides = [1, 1]} : vector<1x96xf32> to vector<1x32xf32>
    %68 = vector.extract_strided_slice %63 {offsets = [0, 64], sizes = [1, 32], strides = [1, 1]} : vector<1x96xf32> to vector<1x32xf32>
    %69 = arith.mulf %67, %52 : vector<1x32xf32>
    %70 = arith.mulf %66, %65 : vector<1x32xf32>
    %71 = arith.addf %69, %70 : vector<1x32xf32>
    %72 = math.tanh %71 : vector<1x32xf32>
    %73 = arith.mulf %68, %72 : vector<1x32xf32>
    %74 = vector.extract_strided_slice %13 {offsets = [3, 0], sizes = [1, 128], strides = [1, 1]} : vector<8x128xf32> to vector<1x128xf32>
    %cst_19 = arith.constant dense<0.000000e+00> : vector<1x128xf32>
    %75 = tpu.matmul %73, %14, %cst_19 {dimension_numbers = #tpu.dot_dimension_numbers<[1], [0], [0], [1], [0, 0, 1, 1], [], []>} : vector<1x32xf32>, vector<32x128xf32>, vector<1x128xf32> -> vector<1x128xf32>
    %76 = arith.addf %74, %75 : vector<1x128xf32>
    %77 = vector.extract_strided_slice %76 {offsets = [0, 0], sizes = [1, 96], strides = [1, 1]} : vector<1x128xf32> to vector<1x96xf32>
    %78 = arith.negf %77 : vector<1x96xf32>
    %79 = math.exp %78 : vector<1x96xf32>
    %cst_20 = arith.constant 1.000000e+00 : f32
    %80 = vector.broadcast %cst_20 : f32 to vector<1x96xf32>
    %81 = arith.addf %80, %79 : vector<1x96xf32>
    %82 = arith.divf %80, %81 : vector<1x96xf32>
    %83 = vector.extract_strided_slice %76 {offsets = [0, 96], sizes = [1, 32], strides = [1, 1]} : vector<1x128xf32> to vector<1x32xf32>
    %84 = math.tanh %83 : vector<1x32xf32>
    %85 = vector.extract_strided_slice %82 {offsets = [0, 0], sizes = [1, 32], strides = [1, 1]} : vector<1x96xf32> to vector<1x32xf32>
    %86 = vector.extract_strided_slice %82 {offsets = [0, 32], sizes = [1, 32], strides = [1, 1]} : vector<1x96xf32> to vector<1x32xf32>
    %87 = vector.extract_strided_slice %82 {offsets = [0, 64], sizes = [1, 32], strides = [1, 1]} : vector<1x96xf32> to vector<1x32xf32>
    %88 = arith.mulf %86, %71 : vector<1x32xf32>
    %89 = arith.mulf %85, %84 : vector<1x32xf32>
    %90 = arith.addf %88, %89 : vector<1x32xf32>
    %91 = math.tanh %90 : vector<1x32xf32>
    %92 = arith.mulf %87, %91 : vector<1x32xf32>
    %93 = vector.extract_strided_slice %13 {offsets = [4, 0], sizes = [1, 128], strides = [1, 1]} : vector<8x128xf32> to vector<1x128xf32>
    %cst_21 = arith.constant dense<0.000000e+00> : vector<1x128xf32>
    %94 = tpu.matmul %92, %14, %cst_21 {dimension_numbers = #tpu.dot_dimension_numbers<[1], [0], [0], [1], [0, 0, 1, 1], [], []>} : vector<1x32xf32>, vector<32x128xf32>, vector<1x128xf32> -> vector<1x128xf32>
    %95 = arith.addf %93, %94 : vector<1x128xf32>
    %96 = vector.extract_strided_slice %95 {offsets = [0, 0], sizes = [1, 96], strides = [1, 1]} : vector<1x128xf32> to vector<1x96xf32>
    %97 = arith.negf %96 : vector<1x96xf32>
    %98 = math.exp %97 : vector<1x96xf32>
    %cst_22 = arith.constant 1.000000e+00 : f32
    %99 = vector.broadcast %cst_22 : f32 to vector<1x96xf32>
    %100 = arith.addf %99, %98 : vector<1x96xf32>
    %101 = arith.divf %99, %100 : vector<1x96xf32>
    %102 = vector.extract_strided_slice %95 {offsets = [0, 96], sizes = [1, 32], strides = [1, 1]} : vector<1x128xf32> to vector<1x32xf32>
    %103 = math.tanh %102 : vector<1x32xf32>
    %104 = vector.extract_strided_slice %101 {offsets = [0, 0], sizes = [1, 32], strides = [1, 1]} : vector<1x96xf32> to vector<1x32xf32>
    %105 = vector.extract_strided_slice %101 {offsets = [0, 32], sizes = [1, 32], strides = [1, 1]} : vector<1x96xf32> to vector<1x32xf32>
    %106 = vector.extract_strided_slice %101 {offsets = [0, 64], sizes = [1, 32], strides = [1, 1]} : vector<1x96xf32> to vector<1x32xf32>
    %107 = arith.mulf %105, %90 : vector<1x32xf32>
    %108 = arith.mulf %104, %103 : vector<1x32xf32>
    %109 = arith.addf %107, %108 : vector<1x32xf32>
    %110 = math.tanh %109 : vector<1x32xf32>
    %111 = arith.mulf %106, %110 : vector<1x32xf32>
    %112 = vector.extract_strided_slice %13 {offsets = [5, 0], sizes = [1, 128], strides = [1, 1]} : vector<8x128xf32> to vector<1x128xf32>
    %cst_23 = arith.constant dense<0.000000e+00> : vector<1x128xf32>
    %113 = tpu.matmul %111, %14, %cst_23 {dimension_numbers = #tpu.dot_dimension_numbers<[1], [0], [0], [1], [0, 0, 1, 1], [], []>} : vector<1x32xf32>, vector<32x128xf32>, vector<1x128xf32> -> vector<1x128xf32>
    %114 = arith.addf %112, %113 : vector<1x128xf32>
    %115 = vector.extract_strided_slice %114 {offsets = [0, 0], sizes = [1, 96], strides = [1, 1]} : vector<1x128xf32> to vector<1x96xf32>
    %116 = arith.negf %115 : vector<1x96xf32>
    %117 = math.exp %116 : vector<1x96xf32>
    %cst_24 = arith.constant 1.000000e+00 : f32
    %118 = vector.broadcast %cst_24 : f32 to vector<1x96xf32>
    %119 = arith.addf %118, %117 : vector<1x96xf32>
    %120 = arith.divf %118, %119 : vector<1x96xf32>
    %121 = vector.extract_strided_slice %114 {offsets = [0, 96], sizes = [1, 32], strides = [1, 1]} : vector<1x128xf32> to vector<1x32xf32>
    %122 = math.tanh %121 : vector<1x32xf32>
    %123 = vector.extract_strided_slice %120 {offsets = [0, 0], sizes = [1, 32], strides = [1, 1]} : vector<1x96xf32> to vector<1x32xf32>
    %124 = vector.extract_strided_slice %120 {offsets = [0, 32], sizes = [1, 32], strides = [1, 1]} : vector<1x96xf32> to vector<1x32xf32>
    %125 = vector.extract_strided_slice %120 {offsets = [0, 64], sizes = [1, 32], strides = [1, 1]} : vector<1x96xf32> to vector<1x32xf32>
    %126 = arith.mulf %124, %109 : vector<1x32xf32>
    %127 = arith.mulf %123, %122 : vector<1x32xf32>
    %128 = arith.addf %126, %127 : vector<1x32xf32>
    %129 = math.tanh %128 : vector<1x32xf32>
    %130 = arith.mulf %125, %129 : vector<1x32xf32>
    %131 = vector.extract_strided_slice %13 {offsets = [6, 0], sizes = [1, 128], strides = [1, 1]} : vector<8x128xf32> to vector<1x128xf32>
    %cst_25 = arith.constant dense<0.000000e+00> : vector<1x128xf32>
    %132 = tpu.matmul %130, %14, %cst_25 {dimension_numbers = #tpu.dot_dimension_numbers<[1], [0], [0], [1], [0, 0, 1, 1], [], []>} : vector<1x32xf32>, vector<32x128xf32>, vector<1x128xf32> -> vector<1x128xf32>
    %133 = arith.addf %131, %132 : vector<1x128xf32>
    %134 = vector.extract_strided_slice %133 {offsets = [0, 0], sizes = [1, 96], strides = [1, 1]} : vector<1x128xf32> to vector<1x96xf32>
    %135 = arith.negf %134 : vector<1x96xf32>
    %136 = math.exp %135 : vector<1x96xf32>
    %cst_26 = arith.constant 1.000000e+00 : f32
    %137 = vector.broadcast %cst_26 : f32 to vector<1x96xf32>
    %138 = arith.addf %137, %136 : vector<1x96xf32>
    %139 = arith.divf %137, %138 : vector<1x96xf32>
    %140 = vector.extract_strided_slice %133 {offsets = [0, 96], sizes = [1, 32], strides = [1, 1]} : vector<1x128xf32> to vector<1x32xf32>
    %141 = math.tanh %140 : vector<1x32xf32>
    %142 = vector.extract_strided_slice %139 {offsets = [0, 0], sizes = [1, 32], strides = [1, 1]} : vector<1x96xf32> to vector<1x32xf32>
    %143 = vector.extract_strided_slice %139 {offsets = [0, 32], sizes = [1, 32], strides = [1, 1]} : vector<1x96xf32> to vector<1x32xf32>
    %144 = vector.extract_strided_slice %139 {offsets = [0, 64], sizes = [1, 32], strides = [1, 1]} : vector<1x96xf32> to vector<1x32xf32>
    %145 = arith.mulf %143, %128 : vector<1x32xf32>
    %146 = arith.mulf %142, %141 : vector<1x32xf32>
    %147 = arith.addf %145, %146 : vector<1x32xf32>
    %148 = math.tanh %147 : vector<1x32xf32>
    %149 = arith.mulf %144, %148 : vector<1x32xf32>
    %150 = vector.extract_strided_slice %13 {offsets = [7, 0], sizes = [1, 128], strides = [1, 1]} : vector<8x128xf32> to vector<1x128xf32>
    %cst_27 = arith.constant dense<0.000000e+00> : vector<1x128xf32>
    %151 = tpu.matmul %149, %14, %cst_27 {dimension_numbers = #tpu.dot_dimension_numbers<[1], [0], [0], [1], [0, 0, 1, 1], [], []>} : vector<1x32xf32>, vector<32x128xf32>, vector<1x128xf32> -> vector<1x128xf32>
    %152 = arith.addf %150, %151 : vector<1x128xf32>
    %153 = vector.extract_strided_slice %152 {offsets = [0, 0], sizes = [1, 96], strides = [1, 1]} : vector<1x128xf32> to vector<1x96xf32>
    %154 = arith.negf %153 : vector<1x96xf32>
    %155 = math.exp %154 : vector<1x96xf32>
    %cst_28 = arith.constant 1.000000e+00 : f32
    %156 = vector.broadcast %cst_28 : f32 to vector<1x96xf32>
    %157 = arith.addf %156, %155 : vector<1x96xf32>
    %158 = arith.divf %156, %157 : vector<1x96xf32>
    %159 = vector.extract_strided_slice %152 {offsets = [0, 96], sizes = [1, 32], strides = [1, 1]} : vector<1x128xf32> to vector<1x32xf32>
    %160 = math.tanh %159 : vector<1x32xf32>
    %161 = vector.extract_strided_slice %158 {offsets = [0, 0], sizes = [1, 32], strides = [1, 1]} : vector<1x96xf32> to vector<1x32xf32>
    %162 = vector.extract_strided_slice %158 {offsets = [0, 32], sizes = [1, 32], strides = [1, 1]} : vector<1x96xf32> to vector<1x32xf32>
    %163 = vector.extract_strided_slice %158 {offsets = [0, 64], sizes = [1, 32], strides = [1, 1]} : vector<1x96xf32> to vector<1x32xf32>
    %164 = arith.mulf %162, %147 : vector<1x32xf32>
    %165 = arith.mulf %161, %160 : vector<1x32xf32>
    %166 = arith.addf %164, %165 : vector<1x32xf32>
    %167 = math.tanh %166 : vector<1x32xf32>
    %168 = arith.mulf %163, %167 : vector<1x32xf32>
    %169 = tpu.concatenate %35, %54, %73, %92, %111, %130, %149, %168 in 0 : vector<1x32xf32>, vector<1x32xf32>, vector<1x32xf32>, vector<1x32xf32>, vector<1x32xf32>, vector<1x32xf32>, vector<1x32xf32>, vector<1x32xf32> -> vector<8x32xf32>
    %c0_29 = arith.constant 0 : index
    %c0_30 = arith.constant 0 : index
    %170 = vector.load %arg6[%c0_29, %c0_30] : memref<32x8xf32, #tpu.memory_space<vmem>>, vector<32x8xf32>
    %cst_31 = arith.constant dense<0.000000e+00> : vector<8x8xf32>
    %171 = tpu.matmul %169, %170, %cst_31 {dimension_numbers = #tpu.dot_dimension_numbers<[1], [0], [0], [1], [0, 0, 1, 1], [], []>} : vector<8x32xf32>, vector<32x8xf32>, vector<8x8xf32> -> vector<8x8xf32>
    %c0_32 = arith.constant 0 : index
    %c0_33 = arith.constant 0 : index
    %172 = vector.load %arg7[%c0_32, %c0_33] : memref<1x8xf32, #tpu.memory_space<vmem>>, vector<1x8xf32>
    %173 = vector.broadcast %172 : vector<1x8xf32> to vector<8x8xf32>
    %174 = arith.addf %171, %173 : vector<8x8xf32>
    %cst_34 = arith.constant dense<0xFF800000> : vector<8xf32>
    %175 = vector.multi_reduction <maximumf>, %174, %cst_34 [1] : vector<8x8xf32> to vector<8xf32>
    %176 = vector.shape_cast %175 : vector<8xf32> to vector<8x1xf32>
    %177 = vector.broadcast %176 : vector<8x1xf32> to vector<8x8xf32>
    %178 = arith.subf %174, %177 : vector<8x8xf32>
    %179 = math.exp %178 : vector<8x8xf32>
    %cst_35 = arith.constant dense<0.000000e+00> : vector<8xf32>
    %180 = vector.multi_reduction <add>, %179, %cst_35 [1] : vector<8x8xf32> to vector<8xf32>
    %181 = vector.shape_cast %180 : vector<8xf32> to vector<8x1xf32>
    %182 = math.log %181 : vector<8x1xf32>
    %183 = arith.addf %176, %182 : vector<8x1xf32>
    %184 = vector.broadcast %183 : vector<8x1xf32> to vector<8x8xf32>
    %185 = arith.subf %174, %184 : vector<8x8xf32>
    %c0_36 = arith.constant 0 : index
    %c0_37 = arith.constant 0 : index
    %c0_38 = arith.constant 0 : index
    %186 = vector.load %arg8[%c0_36, %c0_37, %c0_38] : memref<1x8x8xf32, #tpu.memory_space<vmem>>, vector<1x8x8xf32>
    %187 = vector.shape_cast %186 : vector<1x8x8xf32> to vector<8x8xf32>
    %188 = vector.shape_cast %185 : vector<8x8xf32> to vector<1x8x8xf32>
    tpu.vector_store %arg8[%c0_36, %c0_37, %c0_38], %188 {strides = array<i32>} : memref<1x8x8xf32, #tpu.memory_space<vmem>>, vector<1x8x8xf32>,
    return
  }
  func.func @transform_0(%arg0: i32) -> (i32, i32, i32) {
    %c0_i32 = arith.constant 0 : i32
    %c0_i32_0 = arith.constant 0 : i32
    %c0_i32_1 = arith.constant 0 : i32
    return %arg0, %c0_i32, %c0_i32_0 : i32, i32, i32
  }
  func.func @transform_1(%arg0: i32) -> (i32, i32) {
    %c0_i32 = arith.constant 0 : i32
    %c0_i32_0 = arith.constant 0 : i32
    %c0_i32_1 = arith.constant 0 : i32
    return %c0_i32, %c0_i32_0 : i32, i32
  }
  func.func @transform_2(%arg0: i32) -> (i32, i32) {
    %c0_i32 = arith.constant 0 : i32
    %c0_i32_0 = arith.constant 0 : i32
    %c0_i32_1 = arith.constant 0 : i32
    return %c0_i32, %c0_i32_0 : i32, i32
  }
  func.func @transform_3(%arg0: i32) -> (i32, i32) {
    %c0_i32 = arith.constant 0 : i32
    %c0_i32_0 = arith.constant 0 : i32
    %c0_i32_1 = arith.constant 0 : i32
    return %c0_i32, %c0_i32_0 : i32, i32
  }
  func.func @transform_4(%arg0: i32) -> (i32, i32) {
    %c0_i32 = arith.constant 0 : i32
    %c0_i32_0 = arith.constant 0 : i32
    %c0_i32_1 = arith.constant 0 : i32
    return %c0_i32, %c0_i32_0 : i32, i32
  }
  func.func @transform_5(%arg0: i32) -> (i32, i32) {
    %c0_i32 = arith.constant 0 : i32
    %c0_i32_0 = arith.constant 0 : i32
    %c0_i32_1 = arith.constant 0 : i32
    return %c0_i32, %c0_i32_0 : i32, i32
  }
  func.func @transform_6(%arg0: i32) -> (i32, i32) {
    %c0_i32 = arith.constant 0 : i32
    %c0_i32_0 = arith.constant 0 : i32
    %c0_i32_1 = arith.constant 0 : i32
    return %c0_i32, %c0_i32_0 : i32, i32
  }
  func.func @transform_7(%arg0: i32) -> (i32, i32, i32) {
    %c0_i32 = arith.constant 0 : i32
    %c0_i32_0 = arith.constant 0 : i32
    %c0_i32_1 = arith.constant 0 : i32
    return %arg0, %c0_i32, %c0_i32_0 : i32, i32, i32
  }
}

</mosaic_0001>

<bundles_post_ra>
// kernel: tpu_custom_call.1
= control target key start
LH: loop header
LB: loop body
LE: loop exit
PB: predicated region body
PF: predicated region fallthrough
CT: control target
= control target key end

     0   :  { %12 = vsyncpa [#allocation3], 0  ;;  %s2284_s0 = inlined_call_operand.vmem [shape: s32[2,8,1], index: 0, kind: input, shape index: {}]   ;;  %s2285_s1 = inlined_call_operand.vmem [shape: f32[16,32], index: 1, kind: input, shape index: {}]   ;;  %s2286_s2 = inlined_call_operand.vmem [shape: f32[32,128], index: 2, kind: input, shape index: {}]   ;;  %s2287_s3 = inlined_call_operand.hbm [shape: f32[32,128], index: 3, kind: input, shape index: {}]   ;;  %s2288_s4 = inlined_call_operand.vmem [shape: f32[1,128], index: 4, kind: input, shape index: {}]   ;;  %s2289_s5 = inlined_call_operand.vmem [shape: f32[32,8], index: 5, kind: input, shape index: {}]   ;;  %s2290_s6 = inlined_call_operand.vmem [shape: f32[1,8], index: 6, kind: input, shape index: {}]   ;;  %s2291_s7 = inlined_call_operand.hbm [shape: f32[2,8,8], index: 7, kind: output, shape index: {}]  }
   0x1   :  { %13 = vsyncpa [#allocation4], 0 }
   0x2   :  { %15 = vsyncpa [#allocation4 + $0x1], 0  ;;  %s1979_s24 = smov 0   ;;  %s1981_s25 = smov 0  }
   0x3   :  { %s1983_s26 = smov 0   ;;  %s1985_s27 = smov 0  }
   0x4 LB: > { %s2000_s28 = sadd.s32 4294967295, %s1928_s27   ;;  %s1509_s29 = sadd.s32 4294967294, %s1928_s27   ;;  %s1928_s27 = sphi %s1985_s27, %s2299_s27   ;;  %s1924_s26 = sphi %s1983_s26, %s2298_s26   ;;  %s1920_s25 = sphi %s1981_s25, %s2297_s25   ;;  %s1916_s24 = sphi %s1979_s24, %s2296_s24  }
   0x5   : > { %s2004_s30 = sadd.s32 1, %s1928_s27   ;;  %s180_s8 = sadd.s32 1, %s1924_s26 }
   0x6   : > { %s177_s9 = ssub.s32 %s1928_s27, %s2004_s30  ;;  %p190_p0 = scmp.ne.s32.totalorder %s1924_s26, %s1920_s25 }
   0x7   : > { %p178_p1 = scmp.eq.s32.totalorder %s177_s9, 0  ;;  %p191_p2 = scmp.eq.s32.totalorder %s2000_s28, 1 }
   0x8   : > { %p196_p3 = scmp.ne.s32.totalorder %s1920_s25, %s1916_s24  ;;  %p197_p4 = scmp.eq.s32.totalorder %s1509_s29, 1 }
   0x9   : > { %s2015_s10 = scalar_select %p178_p1, %s1924_s26, %s180_s8  }
   0xa   : > { %p2017_p5 = por %p191_p2, %p190_p0  ;;  %p2021_p6 = por %p197_p4, %p196_p3 }
   0xb   : > { %p1510_p7 = scmp.ge.s32.totalorder %s1928_s27, 1  ;;  %p204_p8 = scmp.lt.s32.totalorder %s1928_s27, 3 }
   0xc   : > { %s2293_s12 = scalar_select %p2021_p6, 1, 0 }
   0xd   : > { %p1726_p9 = scmp.eq.s32.totalorder %s2000_s28, 0  ;;  %p2028_p10 = pnand %p1510_p7, %p204_p8 }
   0xe   : > { %s1930_s14 = smov [#allocation2]  }
   0xf   : > { %s222_s15 = sshll.u32 %s1930_s14, 4  ;;  %p1718_p11 = pneg %p2028_p10  ;;  %s223_s15 = int_to_ptr.vmem [resolvable:$true] %s222_s15 }
  0x10   : > { %s1849_s16 = scalar_lea.vmem %s223_s15, 512  ;;  %p1857_p3 = scmp.lt.s32.totalorder %s223_s15, %s223_s15 }
  0x11   : > { %p1719_p12 = pnand %p1726_p9, %p1718_p11  ;;  %p1850_p0 = scmp.ne.s32.totalorder %s223_s15, %s1849_s16 }
  0x12   : > { %p1858_p4 = scmp.lt.s32.totalorder %s1849_s16, %s1849_s16 }
  0x13   : > { %p1840_p13 = pneg %p1719_p12 }
  0x14   : > { %p1859_p6 = por %p1858_p4, %p1857_p3 }
  0x15   : > { %p1852_p1 = pnand %p1850_p0, %p1840_p13 }
  0x17   : > { %p1853_p2 = pneg %p1852_p1 }
  0x19   : > { %p1860_p7 = pnand %p1859_p6, %p1853_p2 }
  0x1b   : > { %1863 = shalt.err (!%p1860_p7)
}
  0x1c   : > { %s1931_s17 = smov 128   ;;  %s1932_s18 = smov 8  }
  0x1d   : > { %1721 = dma.hbm_to_vmem [thread:$0]  (!%p1719_p12), %s2287_s3, 512, %s223_s15, [#allocation3], %s1931_s17, %s1931_s17, %s1932_s18  }
  0x1e   : > { %254 = sbr.rel (%p2028_p10) target bundleno = 6427 (0x191b), region = 48 }
  0x23   : > { %1907 = dma.done.wait (%p1726_p9), [#allocation3], 512  }
  0x24   : > { %1909 = vsyncadd (%p1726_p9), [#allocation3], 4294966784  ;;  %p285_p8 = scmp.lt.s32.totalorder %s2000_s28, 1  ;;  %v1933_v0 = vmov 0   ;;  %v1934_v1 = vmov 0.0   ;;  %vm1935_vm0 = vmmov 0   ;;  %v290_v8 = vlaneseq }
  0x25   : > { %1769 = vset.pattern.permute.xlu0 %v1933_v0  ;;  %1595 = vmatprep.subr.mxu0 %v1934_v1  ;;  %v299_v3 = vld [vmem:[%s2285_s1 + $0x8] sm:$0xff]  ;;  %v298_v4 = vld [vmem:[%s2285_s1] sm:$0xff]  ;;  %v377_v5 = vld [vmem:[%s2286_s2 + $0x18] sm:$0xff]  ;;  %vm300_vm1 = vcmask 130048   ;;  %vm385_vm3 = vcmask 261120   ;;  %s1936_s9 = smov 32  }
  0x26   : > { %s286_s21 = scalar_select %p285_p8, %s2000_s28, 1  ;;  %1602 = vmatprep.subr.mxu1 %v1934_v1  ;;  %1599 = vmatprep.mubr.msk.f32.mxu0 %vm1935_vm0, %v1934_v1  ;;  %v376_v6 = vld [vmem:[%s2286_s2 + $0x10] sm:$0xff]  ;;  %v375_v7 = vld [vmem:[%s2286_s2 + $0x8] sm:$0xff]  ;;  %v291_v9 = vand.u32 127, %v290_v8  ;;  %v2076_v11 = vld [vmem:[#allocation2 + $0x18] sm:$0xff]  ;;  %vm1309_vm4 = vcmask 1040384  }
  0x27   : > { %1610 = vmatprep.mubr.msk.f32.mxu1 %vm1935_vm0, %v1934_v1  ;;  %1596 = vmatpush3.msra.mxu0 %v299_v3  ;;  %v2079_v13 = vld [vmem:[#allocation2 + $0x10] sm:$0xff]  ;;  %v2085_v14 = vld [vmem:[#allocation2 + $0x8] sm:$0xff]  ;;  %v374_v15 = vld [vmem:[%s2286_s2] sm:$0xff]  ;;  %s1937_s13 = smov 64   ;;  %vm1311_vm5 = vcmask 1041408   ;;  %vm1313_vm6 = vcmask 1042432  }
  0x28   : > { %s1516_s22 = sshll.u32 %s286_s21, 3  ;;  %1597 = vmatprep.subr.mxu0 %v1934_v1  ;;  %1603 = vmatpush3.msra.mxu1 %v377_v5  ;;  %v2094_v16 = vld [vmem:[#allocation2] sm:$0xff]  ;;  %vm1315_vm7 = vcmask 1043456   ;;  %vm1317_vm8 = vcmask 1044480   ;;  %vm1319_vm9 = vcmask 1045504   ;;  %vm1321_vm10 = vcmask 1046528  }
  0x29   : > { %s288_s8 = scalar_lea.vmem %s2284_s0, %s1516_s22  ;;  %1598 = vmatpush3.msra.mxu0 %v298_v4  ;;  %1604 = vmatprep.subr.mxu1 %v1934_v1  ;;  %v1519_v21 = vld [vmem:[%s2288_s4] ss:$0 sm:$0xff]  ;;  %vm1409_vm11 = vcmask 64512   ;;  %s282_s29 = sand.u32 1, %s1920_s25  }
  0x2a   : > { %v289_v2 = vld [vmem:[%s288_s8] sm:$0xff]  ;;  %1613 = vmatprep.subr.mxu0 %v1934_v1  ;;  %1605 = vmatpush3.msra.mxu1 %v376_v6  ;;  %s1515_s8 = sshll.u32 %s282_s29, 3  ;;  %s1425_s18 = scalar_lea.sflag [#allocation4], %s282_s29 }
  0x2b   : > { %293 = vperm.xlu0 %1769, %v289_v2   ;;  %1606 = vmatprep.subr.mxu1 %v1934_v1  ;;  %s1938_s20 = smov [#allocation5]  }
  0x2c   : > { %1607 = vmatpush3.msra.mxu1 %v375_v7  ;;  %s1868_s21 = sshll.u32 %s1938_s20, 4  ;;  %s1869_s21 = int_to_ptr.vmem [resolvable:$false] %s1868_s21 }
  0x2d   : > { %1608 = vmatprep.subr.mxu1 %v1934_v1 }
  0x2e   : > { %1609 = vmatpush3.msra.mxu1 %v374_v15 }
  0x2f   : > { %1624 = vmatprep.subr.mxu1 %v1934_v1 }
  0xa6   : > { %v294_v10 = vpop.permute.xlu0 %293 }
  0xa7   : > { %vm295_vm2 = vcmp.eq.s32.totalorder %v294_v10, %v291_v9 }
  0xa8   : > { %v1517_v12 = vsel %vm295_vm2, 1.0, %v1934_v1 }
  0xa9   : > { %1600 = vmatmul.mubr.msk.f32.vlgmr.msra.gmra.mxu0 %vm300_vm1, %v1517_v12 }
  0xaa   : > { %1614 = vmatpush3.msra.mxu0 %v2076_v11  ;;  %1621 = vmatprep.mubr.msk.f32.mxu0 %vm1935_vm0, %v1934_v1 }
  0xab   : > { %1615 = vmatprep.subr.mxu0 %v1934_v1 }
  0xac   : > { %1616 = vmatpush3.msra.mxu0 %v2079_v13 }
  0xad   : > { %1617 = vmatprep.subr.mxu0 %v1934_v1 }
  0xae   : > { %1618 = vmatpush3.msra.mxu0 %v2085_v14 }
  0xaf   : > { %1619 = vmatprep.subr.mxu0 %v1934_v1 }
  0xb0   : > { %1620 = vmatpush3.msra.mxu0 %v2094_v16 }
  0xb1   : > { %1622 = vmatmul.mubr.f32.vlgmr.msra.gmra.mxu0 %v1934_v1  ;;  %1635 = vmatprep.subr.mxu0 %v1934_v1 }
  0xb2   : > { %1643 = vmatprep.mubr.msk.f32.mxu0 %vm1935_vm0, %v1934_v1  ;;  %1636 = vmatpush3.msra.mxu0 %v2076_v11 }
  0xb3   : > { %1637 = vmatprep.subr.mxu0 %v1934_v1 }
  0xb4   : > { %1638 = vmatpush3.msra.mxu0 %v2079_v13 }
  0xb5   : > { %1639 = vmatprep.subr.mxu0 %v1934_v1 }
  0xb6   : > { %1640 = vmatpush3.msra.mxu0 %v2085_v14 }
  0xb7   : > { %1641 = vmatprep.subr.mxu0 %v1934_v1 }
  0xb8   : > { %1642 = vmatpush3.msra.mxu0 %v2094_v16 }
  0xb9   : > { %1657 = vmatprep.subr.mxu0 %v1934_v1 }
 0x169   : > { %v370_v17 = vpop.f32.mrf.mxu0 }
 0x16a   : > { %1611 = vmatmul.mubr.msk.f32.vlgmr.msra.gmra.mxu1 %vm385_vm3, %v370_v17 }
 0x16b   : > { %v1601_v18 = vpop.f32.mrf.mxu0  ;;  %1625 = vmatpush3.msra.mxu1 %v2076_v11  ;;  %1632 = vmatprep.mubr.msk.f32.mxu1 %vm1935_vm0, %v1934_v1 }
 0x16c   : > { %1626 = vmatprep.subr.mxu1 %v1934_v1 }
 0x16d   : > { %1627 = vmatpush3.msra.mxu1 %v2079_v13 }
 0x16e   : > { %1628 = vmatprep.subr.mxu1 %v1934_v1 }
 0x16f   : > { %1629 = vmatpush3.msra.mxu1 %v2085_v14 }
 0x170   : > { %1630 = vmatprep.subr.mxu1 %v1934_v1 }
 0x171   : > { %1631 = vmatpush3.msra.mxu1 %v2094_v16  ;;  %v532_v19 = vpop.f32.mrf.mxu0 }
 0x172   : > { %1646 = vmatprep.subr.mxu1 %v1934_v1 }
 0x173   : > { %v1623_v20 = vpop.f32.mrf.mxu0 }
 0x22a   : > { %v455_v22 = vpop.f32.mrf.mxu1 }
 0x22b   : > { %v2124_v23 = vadd.f32 %v1519_v21, %v455_v22 }
 0x22c   : > { %v1612_v24 = vpop.f32.mrf.mxu1 }
 0x22d   : > { %v536_v25 = vadd.f32 %v532_v19, %v2124_v23 }
 0x22f   : > { %1770 = vtanh.f32 %v536_v25  ;;  %v1521_v27 = vmul.f32 -1.442695, %v536_v25 }
 0x231   : > { %1772 = vpow2.f32 %v1521_v27 }
 0x23c   : > { %v1771_v26 = vpop.eup %1770 }
 0x23d   : > { %546 = vrot.lane.b32.xlu0 %v1771_v26, %s1936_s9 }
 0x23e   : > { %v1773_v28 = vpop.eup %1772 }
 0x23f   : > { %v540_v29 = vadd.f32 1.0, %v1773_v28 }
 0x241   : > { %1774 = vrcp.f32 %v540_v29 }
 0x24e   : > { %v1775_v30 = vpop.eup %1774 }
 0x24f   : > { %v544_v33 = vmul.f32 0.0, %v1775_v30 }
 0x2af   : > { %v547_v31 = vpop.permute.xlu0 %546 }
 0x2b0   : > { %v549_v32 = vmul.f32 %v1775_v30, %v547_v31 }
 0x2b2   : > { %551 = vrot.lane.b32.xlu1 %v549_v32, %s1936_s9 }
 0x324   : > { %v552_v34 = vpop.permute.xlu1 %551 }
 0x325   : > { %v554_v35 = vadd.f32 %v552_v34, %v544_v33 }
 0x327   : > { %1776 = vtanh.f32 %v554_v35  ;;  %v648_v51 = vrot.slane %v554_v35, 7 }
 0x334   : > { %v1777_v36 = vpop.eup %1776 }
 0x335   : > { %557 = vrot.lane.b32.xlu1 %v1777_v36, %s1936_s9 }
 0x3a7   : > { %v558_v37 = vpop.permute.xlu1 %557 }
 0x3a8   : > { %v2130_v38 = vmul.f32 %v1775_v30, %v558_v37 }
 0x3aa   : > { %562 = vrot.lane.b32.xlu0 %v2130_v38, %s1937_s13 }
 0x41c   : > { %v563_v39 = vpop.permute.xlu0 %562 }
 0x41d   : > { %1633 = vmatmul.mubr.msk.f32.vlgmr.msra.gmra.mxu1 %vm385_vm3, %v563_v39 }
 0x41e   : > { %1647 = vmatpush3.msra.mxu1 %v2076_v11  ;;  %1654 = vmatprep.mubr.msk.f32.mxu1 %vm1935_vm0, %v1934_v1 }
 0x41f   : > { %1648 = vmatprep.subr.mxu1 %v1934_v1 }
 0x420   : > { %1649 = vmatpush3.msra.mxu1 %v2079_v13 }
 0x421   : > { %1650 = vmatprep.subr.mxu1 %v1934_v1 }
 0x422   : > { %1651 = vmatpush3.msra.mxu1 %v2085_v14 }
 0x423   : > { %1652 = vmatprep.subr.mxu1 %v1934_v1 }
 0x424   : > { %1653 = vmatpush3.msra.mxu1 %v2094_v16 }
 0x425   : > { %1668 = vmatprep.subr.mxu1 %v1934_v1 }
 0x4dd   : > { %v632_v40 = vpop.f32.mrf.mxu1 }
 0x4de   : > { %v637_v41 = vrot.slane %v632_v40, 7 }
 0x4df   : > { %v1634_v42 = vpop.f32.mrf.mxu1 }
 0x4e0   : > { %v639_v43 = vadd.f32 %v637_v41, %v2124_v23 }
 0x4e2   : > { %1778 = vtanh.f32 %v639_v43  ;;  %v1523_v45 = vmul.f32 -1.442695, %v639_v43 }
 0x4e4   : > { %1780 = vpow2.f32 %v1523_v45 }
 0x4ef   : > { %v1779_v44 = vpop.eup %1778 }
 0x4f0   : > { %652 = vrot.lane.b32.xlu1 %v1779_v44, %s1936_s9 }
 0x4f1   : > { %v1781_v46 = vpop.eup %1780 }
 0x4f2   : > { %v643_v47 = vadd.f32 1.0, %v1781_v46 }
 0x4f4   : > { %1782 = vrcp.f32 %v643_v47 }
 0x501   : > { %v1783_v48 = vpop.eup %1782 }
 0x502   : > { %v650_v52 = vmul.f32 %v1783_v48, %v648_v51 }
 0x562   : > { %v653_v49 = vpop.permute.xlu1 %652 }
 0x563   : > { %v655_v50 = vmul.f32 %v1783_v48, %v653_v49 }
 0x565   : > { %657 = vrot.lane.b32.xlu0 %v655_v50, %s1936_s9 }
 0x5d7   : > { %v658_v53 = vpop.permute.xlu0 %657 }
 0x5d8   : > { %v660_v54 = vadd.f32 %v658_v53, %v650_v52 }
 0x5da   : > { %1784 = vtanh.f32 %v660_v54  ;;  %v755_v8 = vrot.slane %v660_v54, 7 }
 0x5e7   : > { %v1785_v55 = vpop.eup %1784 }
 0x5e8   : > { %663 = vrot.lane.b32.xlu1 %v1785_v55, %s1936_s9 }
 0x65a   : > { %v664_v56 = vpop.permute.xlu1 %663 }
 0x65b   : > { %v666_v57 = vmul.f32 %v1783_v48, %v664_v56 }
 0x65d   : > { %v668_v58 = vrot.slane %v666_v57, 1  ;;  %v1310_v19 = vsel %vm1309_vm4, %v2130_v38, %v666_v57 }
 0x65f   : > { %669 = vrot.lane.b32.xlu0 %v668_v58, %s1937_s13 }
 0x6d1   : > { %v670_v59 = vpop.permute.xlu0 %669 }
 0x6d2   : > { %1644 = vmatmul.mubr.msk.f32.vlgmr.msra.gmra.mxu0 %vm385_vm3, %v670_v59 }
 0x6d3   : > { %1658 = vmatpush3.msra.mxu0 %v2076_v11  ;;  %1665 = vmatprep.mubr.msk.f32.mxu0 %vm1935_vm0, %v1934_v1 }
 0x6d4   : > { %1659 = vmatprep.subr.mxu0 %v1934_v1 }
 0x6d5   : > { %1660 = vmatpush3.msra.mxu0 %v2079_v13 }
 0x6d6   : > { %1661 = vmatprep.subr.mxu0 %v1934_v1 }
 0x6d7   : > { %1662 = vmatpush3.msra.mxu0 %v2085_v14 }
 0x6d8   : > { %1663 = vmatprep.subr.mxu0 %v1934_v1 }
 0x6d9   : > { %1664 = vmatpush3.msra.mxu0 %v2094_v16 }
 0x6da   : > { %1679 = vmatprep.subr.mxu0 %v1934_v1 }
 0x792   : > { %v739_v60 = vpop.f32.mrf.mxu0 }
 0x793   : > { %v744_v61 = vrot.slane %v739_v60, 6 }
 0x794   : > { %v1645_v62 = vpop.f32.mrf.mxu0 }
 0x795   : > { %v746_v63 = vadd.f32 %v744_v61, %v2124_v23 }
 0x797   : > { %1786 = vtanh.f32 %v746_v63  ;;  %v1525_v2 = vmul.f32 -1.442695, %v746_v63 }
 0x799   : > { %1788 = vpow2.f32 %v1525_v2 }
 0x7a4   : > { %v1787_v0 = vpop.eup %1786 }
 0x7a5   : > { %759 = vrot.lane.b32.xlu1 %v1787_v0, %s1936_s9 }
 0x7a6   : > { %v1789_v3 = vpop.eup %1788 }
 0x7a7   : > { %v750_v4 = vadd.f32 1.0, %v1789_v3 }
 0x7a9   : > { %1790 = vrcp.f32 %v750_v4 }
 0x7b6   : > { %v1791_v5 = vpop.eup %1790 }
 0x7b7   : > { %v757_v9 = vmul.f32 %v1791_v5, %v755_v8 }
 0x817   : > { %v760_v6 = vpop.permute.xlu1 %759 }
 0x818   : > { %v762_v7 = vmul.f32 %v1791_v5, %v760_v6 }
 0x81a   : > { %764 = vrot.lane.b32.xlu0 %v762_v7, %s1936_s9 }
 0x88c   : > { %v765_v10 = vpop.permute.xlu0 %764 }
 0x88d   : > { %v767_v12 = vadd.f32 %v765_v10, %v757_v9 }
 0x88f   : > { %1792 = vtanh.f32 %v767_v12  ;;  %v862_v35 = vrot.slane %v767_v12, 7 }
 0x89c   : > { %v1793_v15 = vpop.eup %1792 }
 0x89d   : > { %770 = vrot.lane.b32.xlu1 %v1793_v15, %s1936_s9 }
 0x90f   : > { %v771_v17 = vpop.permute.xlu1 %770 }
 0x910   : > { %v773_v18 = vmul.f32 %v1791_v5, %v771_v17 }
 0x912   : > { %v775_v20 = vrot.slane %v773_v18, 2  ;;  %v1312_v21 = vsel %vm1311_vm5, %v1310_v19, %v773_v18 }
 0x914   : > { %776 = vrot.lane.b32.xlu0 %v775_v20, %s1937_s13 }
 0x986   : > { %v777_v22 = vpop.permute.xlu0 %776 }
 0x987   : > { %1655 = vmatmul.mubr.msk.f32.vlgmr.msra.gmra.mxu1 %vm385_vm3, %v777_v22 }
 0x988   : > { %1669 = vmatpush3.msra.mxu1 %v2076_v11  ;;  %1676 = vmatprep.mubr.msk.f32.mxu1 %vm1935_vm0, %v1934_v1 }
 0x989   : > { %1670 = vmatprep.subr.mxu1 %v1934_v1 }
 0x98a   : > { %1671 = vmatpush3.msra.mxu1 %v2079_v13 }
 0x98b   : > { %1672 = vmatprep.subr.mxu1 %v1934_v1 }
 0x98c   : > { %1673 = vmatpush3.msra.mxu1 %v2085_v14 }
 0x98d   : > { %1674 = vmatprep.subr.mxu1 %v1934_v1 }
 0x98e   : > { %1675 = vmatpush3.msra.mxu1 %v2094_v16 }
 0x98f   : > { %1690 = vmatprep.subr.mxu1 %v1934_v1 }
 0xa47   : > { %v846_v24 = vpop.f32.mrf.mxu1 }
 0xa48   : > { %v851_v25 = vrot.slane %v846_v24, 5 }
 0xa49   : > { %v1656_v26 = vpop.f32.mrf.mxu1 }
 0xa4a   : > { %v853_v27 = vadd.f32 %v851_v25, %v2124_v23 }
 0xa4c   : > { %1794 = vtanh.f32 %v853_v27  ;;  %v1527_v29 = vmul.f32 -1.442695, %v853_v27 }
 0xa4e   : > { %1796 = vpow2.f32 %v1527_v29 }
 0xa59   : > { %v1795_v28 = vpop.eup %1794 }
 0xa5a   : > { %866 = vrot.lane.b32.xlu1 %v1795_v28, %s1936_s9 }
 0xa5b   : > { %v1797_v30 = vpop.eup %1796 }
 0xa5c   : > { %v857_v31 = vadd.f32 1.0, %v1797_v30 }
 0xa5e   : > { %1798 = vrcp.f32 %v857_v31 }
 0xa6b   : > { %v1799_v32 = vpop.eup %1798 }
 0xa6c   : > { %v864_v36 = vmul.f32 %v1799_v32, %v862_v35 }
 0xacc   : > { %v867_v33 = vpop.permute.xlu1 %866 }
 0xacd   : > { %v869_v34 = vmul.f32 %v1799_v32, %v867_v33 }
 0xacf   : > { %871 = vrot.lane.b32.xlu0 %v869_v34, %s1936_s9 }
 0xb41   : > { %v872_v37 = vpop.permute.xlu0 %871 }
 0xb42   : > { %v874_v38 = vadd.f32 %v872_v37, %v864_v36 }
 0xb44   : > { %1800 = vtanh.f32 %v874_v38  ;;  %v969_v56 = vrot.slane %v874_v38, 7 }
 0xb51   : > { %v1801_v39 = vpop.eup %1800 }
 0xb52   : > { %877 = vrot.lane.b32.xlu1 %v1801_v39, %s1936_s9 }
 0xbc4   : > { %v878_v40 = vpop.permute.xlu1 %877 }
 0xbc5   : > { %v880_v41 = vmul.f32 %v1799_v32, %v878_v40 }
 0xbc7   : > { %v882_v42 = vrot.slane %v880_v41, 3  ;;  %v1314_v43 = vsel %vm1313_vm6, %v1312_v21, %v880_v41 }
 0xbc9   : > { %883 = vrot.lane.b32.xlu0 %v882_v42, %s1937_s13 }
 0xc3b   : > { %v884_v44 = vpop.permute.xlu0 %883 }
 0xc3c   : > { %1666 = vmatmul.mubr.msk.f32.vlgmr.msra.gmra.mxu0 %vm385_vm3, %v884_v44 }
 0xc3d   : > { %1680 = vmatpush3.msra.mxu0 %v2076_v11  ;;  %1687 = vmatprep.mubr.msk.f32.mxu0 %vm1935_vm0, %v1934_v1 }
 0xc3e   : > { %1681 = vmatprep.subr.mxu0 %v1934_v1 }
 0xc3f   : > { %1682 = vmatpush3.msra.mxu0 %v2079_v13 }
 0xc40   : > { %1683 = vmatprep.subr.mxu0 %v1934_v1 }
 0xc41   : > { %1684 = vmatpush3.msra.mxu0 %v2085_v14 }
 0xc42   : > { %1685 = vmatprep.subr.mxu0 %v1934_v1 }
 0xc43   : > { %1686 = vmatpush3.msra.mxu0 %v2094_v16 }
 0xc44   : > { %1701 = vmatprep.subr.mxu0 %v1934_v1 }
 0xcfc   : > { %v953_v45 = vpop.f32.mrf.mxu0 }
 0xcfd   : > { %v958_v46 = vrot.slane %v953_v45, 4 }
 0xcfe   : > { %v1667_v47 = vpop.f32.mrf.mxu0 }
 0xcff   : > { %v960_v48 = vadd.f32 %v958_v46, %v2124_v23 }
 0xd01   : > { %1802 = vtanh.f32 %v960_v48  ;;  %v1529_v50 = vmul.f32 -1.442695, %v960_v48 }
 0xd03   : > { %1804 = vpow2.f32 %v1529_v50 }
 0xd0e   : > { %v1803_v49 = vpop.eup %1802 }
 0xd0f   : > { %973 = vrot.lane.b32.xlu1 %v1803_v49, %s1936_s9 }
 0xd10   : > { %v1805_v51 = vpop.eup %1804 }
 0xd11   : > { %v964_v52 = vadd.f32 1.0, %v1805_v51 }
 0xd13   : > { %1806 = vrcp.f32 %v964_v52 }
 0xd20   : > { %v1807_v53 = vpop.eup %1806 }
 0xd21   : > { %v971_v57 = vmul.f32 %v1807_v53, %v969_v56 }
 0xd81   : > { %v974_v54 = vpop.permute.xlu1 %973 }
 0xd82   : > { %v976_v55 = vmul.f32 %v1807_v53, %v974_v54 }
 0xd84   : > { %978 = vrot.lane.b32.xlu0 %v976_v55, %s1936_s9 }
 0xdf6   : > { %v979_v58 = vpop.permute.xlu0 %978 }
 0xdf7   : > { %v981_v59 = vadd.f32 %v979_v58, %v971_v57 }
 0xdf9   : > { %1808 = vtanh.f32 %v981_v59 }
 0xe06   : > { %v1809_v60 = vpop.eup %1808 }
 0xe07   : > { %984 = vrot.lane.b32.xlu1 %v1809_v60, %s1936_s9 }
 0xe79   : > { %v985_v61 = vpop.permute.xlu1 %984 }
 0xe7a   : > { %v987_v62 = vmul.f32 %v1807_v53, %v985_v61  ;;  %v1325_v61 = vld [vmem:[%s2289_s5 + $0x10] sm:$0xff] }
 0xe7c   : > { %v989_v63 = vrot.slane %v987_v62, 4  ;;  %v1316_v0 = vsel %vm1315_vm7, %v1314_v43, %v987_v62  ;;  %v1324_v62 = vld [vmem:[%s2289_s5 + $0x8] sm:$0xff] }
 0xe7e   : > { %990 = vrot.lane.b32.xlu0 %v989_v63, %s1937_s13  ;;  %v1323_v63 = vld [vmem:[%s2289_s5] sm:$0xff] }
 0xef0   : > { %v991_v2 = vpop.permute.xlu0 %990 }
 0xef1   : > { %1677 = vmatmul.mubr.msk.f32.vlgmr.msra.gmra.mxu1 %vm385_vm3, %v991_v2 }
 0xef2   : > { %1691 = vmatpush3.msra.mxu1 %v2076_v11  ;;  %1698 = vmatprep.mubr.msk.f32.mxu1 %vm1935_vm0, %v1934_v1 }
 0xef3   : > { %1692 = vmatprep.subr.mxu1 %v1934_v1 }
 0xef4   : > { %1693 = vmatpush3.msra.mxu1 %v2079_v13 }
 0xef5   : > { %1694 = vmatprep.subr.mxu1 %v1934_v1 }
 0xef6   : > { %1695 = vmatpush3.msra.mxu1 %v2085_v14 }
 0xef7   : > { %1696 = vmatprep.subr.mxu1 %v1934_v1 }
 0xef8   : > { %1697 = vmatpush3.msra.mxu1 %v2094_v16  ;;  %v1076_v16 = vrot.slane %v981_v59, 7 }
 0xfb1   : > { %v1060_v3 = vpop.f32.mrf.mxu1 }
 0xfb2   : > { %v1065_v4 = vrot.slane %v1060_v3, 3 }
 0xfb3   : > { %v1678_v5 = vpop.f32.mrf.mxu1 }
 0xfb4   : > { %v1067_v11 = vadd.f32 %v1065_v4, %v2124_v23 }
 0xfb6   : > { %1810 = vtanh.f32 %v1067_v11  ;;  %v1531_v7 = vmul.f32 -1.442695, %v1067_v11  ;;  %v1536_v11 = vld [vmem:[%s2290_s6] ss:$0 sm:$0xff] }
 0xfb8   : > { %1812 = vpow2.f32 %v1531_v7 }
 0xfc3   : > { %v1811_v6 = vpop.eup %1810 }
 0xfc4   : > { %1080 = vrot.lane.b32.xlu1 %v1811_v6, %s1936_s9 }
 0xfc5   : > { %v1813_v13 = vpop.eup %1812 }
 0xfc6   : > { %v1071_v8 = vadd.f32 1.0, %v1813_v13 }
 0xfc8   : > { %1814 = vrcp.f32 %v1071_v8 }
 0xfd5   : > { %v1815_v9 = vpop.eup %1814 }
 0xfd6   : > { %v1078_v12 = vmul.f32 %v1815_v9, %v1076_v16 }
0x1036   : > { %v1081_v14 = vpop.permute.xlu1 %1080 }
0x1037   : > { %v1083_v10 = vmul.f32 %v1815_v9, %v1081_v14 }
0x1039   : > { %1085 = vrot.lane.b32.xlu0 %v1083_v10, %s1936_s9 }
0x10ab   : > { %v1086_v15 = vpop.permute.xlu0 %1085 }
0x10ac   : > { %v1088_v17 = vadd.f32 %v1086_v15, %v1078_v12 }
0x10ae   : > { %1816 = vtanh.f32 %v1088_v17  ;;  %v1183_v36 = vrot.slane %v1088_v17, 7 }
0x10bb   : > { %v1817_v18 = vpop.eup %1816 }
0x10bc   : > { %1091 = vrot.lane.b32.xlu1 %v1817_v18, %s1936_s9 }
0x112e   : > { %v1092_v19 = vpop.permute.xlu1 %1091 }
0x112f   : > { %v1094_v20 = vmul.f32 %v1815_v9, %v1092_v19 }
0x1131   : > { %v1096_v21 = vrot.slane %v1094_v20, 5  ;;  %v1318_v22 = vsel %vm1317_vm8, %v1316_v0, %v1094_v20 }
0x1133   : > { %1097 = vrot.lane.b32.xlu0 %v1096_v21, %s1937_s13 }
0x11a5   : > { %v1098_v24 = vpop.permute.xlu0 %1097 }
0x11a6   : > { %1688 = vmatmul.mubr.msk.f32.vlgmr.msra.gmra.mxu0 %vm385_vm3, %v1098_v24 }
0x11a7   : > { %1709 = vmatprep.mubr.msk.f32.mxu0 %vm1935_vm0, %v1934_v1 }
0x1266   : > { %v1167_v25 = vpop.f32.mrf.mxu0 }
0x1267   : > { %v1172_v26 = vrot.slane %v1167_v25, 2 }
0x1268   : > { %v1689_v27 = vpop.f32.mrf.mxu0 }
0x1269   : > { %v1174_v28 = vadd.f32 %v1172_v26, %v2124_v23 }
0x126b   : > { %1818 = vtanh.f32 %v1174_v28  ;;  %v1533_v30 = vmul.f32 -1.442695, %v1174_v28 }
0x126d   : > { %1820 = vpow2.f32 %v1533_v30 }
0x1278   : > { %v1819_v29 = vpop.eup %1818 }
0x1279   : > { %1187 = vrot.lane.b32.xlu1 %v1819_v29, %s1936_s9 }
0x127a   : > { %v1821_v31 = vpop.eup %1820 }
0x127b   : > { %v1178_v32 = vadd.f32 1.0, %v1821_v31 }
0x127d   : > { %1822 = vrcp.f32 %v1178_v32 }
0x128a   : > { %v1823_v33 = vpop.eup %1822 }
0x128b   : > { %v1185_v37 = vmul.f32 %v1823_v33, %v1183_v36 }
0x12eb   : > { %v1188_v34 = vpop.permute.xlu1 %1187 }
0x12ec   : > { %v1190_v35 = vmul.f32 %v1823_v33, %v1188_v34 }
0x12ee   : > { %1192 = vrot.lane.b32.xlu0 %v1190_v35, %s1936_s9 }
0x1360   : > { %v1193_v38 = vpop.permute.xlu0 %1192 }
0x1361   : > { %v1195_v39 = vadd.f32 %v1193_v38, %v1185_v37 }
0x1363   : > { %1824 = vtanh.f32 %v1195_v39  ;;  %v1290_v57 = vrot.slane %v1195_v39, 7 }
0x1370   : > { %v1825_v40 = vpop.eup %1824 }
0x1371   : > { %1198 = vrot.lane.b32.xlu1 %v1825_v40, %s1936_s9 }
0x13e3   : > { %v1199_v41 = vpop.permute.xlu1 %1198 }
0x13e4   : > { %v1201_v42 = vmul.f32 %v1823_v33, %v1199_v41 }
0x13e6   : > { %v1203_v43 = vrot.slane %v1201_v42, 6  ;;  %v1320_v44 = vsel %vm1319_vm9, %v1318_v22, %v1201_v42 }
0x13e8   : > { %1204 = vrot.lane.b32.xlu0 %v1203_v43, %s1937_s13 }
0x145a   : > { %v1205_v45 = vpop.permute.xlu0 %1204 }
0x145b   : > { %1699 = vmatmul.mubr.msk.f32.vlgmr.msra.gmra.mxu1 %vm385_vm3, %v1205_v45 }
0x151b   : > { %v1274_v46 = vpop.f32.mrf.mxu1 }
0x151c   : > { %v1279_v47 = vrot.slane %v1274_v46, 1 }
0x151d   : > { %v1700_v48 = vpop.f32.mrf.mxu1 }
0x151e   : > { %v1281_v49 = vadd.f32 %v1279_v47, %v2124_v23  ;;  %v1326_v23 = vld [vmem:[%s2289_s5 + $0x18] sm:$0xff] }
0x151f   : > { %1702 = vmatpush3.msra.mxu0 %v1326_v23 }
0x1520   : > { %1826 = vtanh.f32 %v1281_v49  ;;  %v1535_v51 = vmul.f32 -1.442695, %v1281_v49  ;;  %1703 = vmatprep.subr.mxu0 %v1934_v1 }
0x1521   : > { %1704 = vmatpush3.msra.mxu0 %v1325_v61 }
0x1522   : > { %1828 = vpow2.f32 %v1535_v51  ;;  %1705 = vmatprep.subr.mxu0 %v1934_v1 }
0x1523   : > { %1706 = vmatpush3.msra.mxu0 %v1324_v62 }
0x1524   : > { %1707 = vmatprep.subr.mxu0 %v1934_v1 }
0x1525   : > { %1708 = vmatpush3.msra.mxu0 %v1323_v63 }
0x152d   : > { %v1827_v50 = vpop.eup %1826 }
0x152e   : > { %1294 = vrot.lane.b32.xlu1 %v1827_v50, %s1936_s9 }
0x152f   : > { %v1829_v52 = vpop.eup %1828 }
0x1530   : > { %v1285_v53 = vadd.f32 1.0, %v1829_v52 }
0x1532   : > { %1830 = vrcp.f32 %v1285_v53 }
0x153f   : > { %v1831_v54 = vpop.eup %1830 }
0x1540   : > { %v1292_v58 = vmul.f32 %v1831_v54, %v1290_v57 }
0x15a0   : > { %v1295_v55 = vpop.permute.xlu1 %1294 }
0x15a1   : > { %v1297_v56 = vmul.f32 %v1831_v54, %v1295_v55 }
0x15a3   : > { %1299 = vrot.lane.b32.xlu0 %v1297_v56, %s1936_s9 }
0x1615   : > { %v1300_v59 = vpop.permute.xlu0 %1299 }
0x1616   : > { %v1302_v60 = vadd.f32 %v1300_v59, %v1292_v58 }
0x1618   : > { %1832 = vtanh.f32 %v1302_v60 }
0x1625   : > { %v1833_v0 = vpop.eup %1832 }
0x1626   : > { %1305 = vrot.lane.b32.xlu1 %v1833_v0, %s1936_s9  ;;  %s1539_s9 = sshll.u32 %s2000_s28, 7  ;;  %s1870_s28 = scalar_lea.vmem %s1869_s21, 256 }
0x1627   : > { %s1436_s17 = scalar_lea.hbm %s2291_s7, %s1539_s9 }
0x1698   : > { %v1306_v2 = vpop.permute.xlu1 %1305 }
0x1699   : > { %v1308_v3 = vmul.f32 %v1831_v54, %v1306_v2 }
0x169b   : > { %v1322_v4 = vsel %vm1321_vm10, %v1320_v44, %v1308_v3 }
0x169c   : > { %1335 = vrot.lane.b32.xlu0 %v1322_v4, %s1937_s13  ;;  %s284_s13 = scalar_lea.vmem [#allocation5], %s1515_s8 }
0x169d   : > { %s1438_s14 = sshll.u32 %s284_s13, 4  ;;  %s1439_s14 = int_to_ptr.vmem [resolvable:$true] %s1438_s14 }
0x169e   : > { %s1864_s19 = scalar_lea.vmem %s1439_s14, 128  ;;  %p1871_p11 = scmp.lt.s32.totalorder %s1439_s14, %s1869_s21 }
0x169f   : > { %p1865_p6 = scmp.ne.s32.totalorder %s1439_s14, %s1864_s19  ;;  %p1872_p12 = scmp.lt.s32.totalorder %s1870_s28, %s1864_s19 }
0x16a1   : > { %p1866_p9 = pnand %p1865_p6, %p2017_p5  ;;  %p1873_p13 = por %p1872_p12, %p1871_p11 }
0x16a3   : > { %p1867_p10 = pneg %p1866_p9 }
0x16a5   : > { %p1874_p0 = pnand %p1873_p13, %p1867_p10 }
0x170e   : > { %v1336_v5 = vpop.permute.xlu0 %1335 }
0x170f   : > { %1710 = vmatmul.mubr.msk.f32.vlgmr.msra.gmra.mxu0 %vm385_vm3, %v1336_v5 }
0x17cf   : > { %v1405_v6 = vpop.f32.mrf.mxu0 }
0x17d0   : > { %v1406_v1 = vadd.f32 %v1536_v11, %v1405_v6 }
0x17d1   : > { %v1711_v7 = vpop.f32.mrf.mxu0 }
0x17d2   : > { %v1410_v13 = vsel %vm1409_vm11, %v1406_v1, -inf }
0x17d3   : > { %1411 = vmax.xlane.f32.xlu1 %v1410_v13 }
0x185c   : > { %v1412_v8 = vpop.xlane.xlu1 %1411 }
0x185d   : > { %v1413_v9 = vsub.f32 %v1406_v1, %v1412_v8 }
0x185f   : > { %v1414_v14 = vmul.f32 1.442695, %v1413_v9 }
0x1861   : > { %1834 = vpow2.f32 %v1414_v14 }
0x186e   : > { %v1835_v10 = vpop.eup %1834 }
0x186f   : > { %v1416_v16 = vsel %vm1409_vm11, %v1835_v10, 0.0 }
0x1870   : > { %1417 = vadd.xlane.f32.xlu0 %v1416_v16 }
0x18f9   : > { %v1418_v12 = vpop.xlane.xlu0 %1417 }
0x18fa   : > { %1836 = vlog2.f32 %v1418_v12 }
0x1907   : > { %v1837_v15 = vpop.eup %1836 }
0x1908   : > { %v1420_v17 = vmul.f32 0.6931472, %v1837_v15 }
0x190a   : > { %v1421_v18 = vadd.f32 %v1420_v17, %v1412_v8 }
0x190c   : > { %v1422_v19 = vsub.f32 %v1406_v1, %v1421_v18 }
0x190e   : > { %1423 = vst.msk [vmem:[%s284_s13] sm:$0xff] %vm1409_vm11, %v1422_v19 }
0x190f   : > { %1877 = shalt.err (!%p1874_p0)
}
0x1910   : > { %s1878_s22 = scalar_lea.hbm %s1436_s17, 128  ;;  %s1882_s8 = scalar_lea.hbm %s2291_s7, 256 }
0x1911   : > { %p1879_p1 = scmp.ne.s32.totalorder %s1436_s17, %s1878_s22  ;;  %p1883_p4 = scmp.lt.s32.totalorder %s1436_s17, %s2291_s7 }
0x1912   : > { %p1884_p7 = scmp.lt.s32.totalorder %s1882_s8, %s1878_s22 }
0x1913   : > { %p1880_p2 = pnand %p1879_p1, %p2017_p5 }
0x1914   : > { %p1885_p8 = por %p1884_p7, %p1883_p4 }
0x1915   : > { %p1881_p3 = pneg %p1880_p2 }
0x1917   : > { %p1886_p6 = pnand %p1885_p8, %p1881_p3 }
0x1919   : > { %1889 = shalt.err (!%p1886_p6)
}
0x191a   : > { %1716 = dma.vmem_to_hbm [thread:$0]  (%p2017_p5), %s1439_s14, 128, %s1436_s17, %s1425_s18  }
0x191b PF: > { %p1728_p9 = scmp.ge.s32.totalorder %s1928_s27, 2  ;;  %s1450_s15 = sand.u32 1, %s1916_s24  }
0x191c   : > { %p2295_p10 = scmp.ne.s32.totalorder %s2293_s12, 0  ;;  %s1451_s16 = scalar_lea.sflag [#allocation4], %s1450_s15 }
0x191e   : > { %p1723_p11 = pnand %p1728_p9, %p2295_p10 }
0x1920   : > { %p1724_p12 = pneg %p1723_p11 }
0x1922   : > { %1911 = dma.done.wait (%p1724_p12), %s1451_s16, 128  }
0x1923   : > { %1913 = vsyncadd (%p1724_p12), %s1451_s16, 4294967168  ;;  %p18_p13 = scmp.ge.s32.totalorder %s2004_s30, 4   ;;  %s2296_s24 = smov %s1920_s25 }
0x1924   : > { %s2297_s25 = smov %s1924_s26  ;;  %s2298_s26 = smov %s2015_s10 }
0x1925   : > { %s2299_s27 = smov %s2004_s30  ;;  %20 = sbr.rel (!%p18_p13) target bundleno = 4 (0x4), region = 88 }
0x192a   :  { %1456 = vsyncpa [#allocation3], 1 }
0x192b   :  { %1458 = vsyncpa [#allocation3 + $0x1], 1 }
0x192c   :  { %1459 = vsyncpa [#allocation4], 1 }
0x192d   :  { %1461 = vsyncpa [#allocation4 + $0x1], 1 }

</bundles_post_ra>
